<compile_context>
chip_gen: v7x
topology: tpu7x:2x2x1
jax: 0.10.0
libtpu: 0.0.40
codegen_flags: <defaults>
</compile_context>

<pallas_src>
import jax
import jax.numpy as jnp
from jax.experimental import pallas as pl
from jax.experimental.pallas import tpu as pltpu


def _make_embedding_kernel(tp: int, total_tokens: int):
    """Build the kernel with the static token-layout offsets baked in."""
    chunk_lens = [tp, tp, total_tokens - 2 * tp]   # x rows per plane segment
    chunk_starts = [0, tp, 2 * tp]                 # where each chunk starts in x

    def kernel(x_ref, bias_ref, o_ref):
        # x_ref:    (TB, T, te)
        # bias_ref: (S, te)   positions + plane, cls/sep already folded in
        # o_ref:    (TB, S, te)
        tb = o_ref.shape[0]
        te = o_ref.shape[2]
        out_dtype = o_ref.dtype

        def write_special_row(r):
            # cls / sep rows: just the (precombined) bias row, broadcast over TB.
            row = jnp.broadcast_to(bias_ref[r : r + 1, :][None], (tb, 1, te))
            o_ref[:, r : r + 1, :] = row.astype(out_dtype)

        write_special_row(0)                       # cls row
        out_off = 1
        for k in range(3):
            n = chunk_lens[k]
            xs = chunk_starts[k]
            # x chunk k + bias rows for those output positions (single add).
            o_ref[:, out_off : out_off + n, :] = (
                x_ref[:, xs : xs + n, :]
                + bias_ref[out_off : out_off + n, :][None]
            ).astype(out_dtype)
            write_special_row(out_off + n)         # trailing sep row
            out_off += n + 1

    return kernel


def _largest_divisor_leq(n: int, cap: int) -> int:
    cap = max(1, min(n, cap))
    for d in range(cap, 0, -1):
        if n % d == 0:
            return d
    return 1


def _pick_tiles(B: int, T: int, S: int, E: int, itemsize: int):
    """Jointly pick (TB, te) under a VMEM-friendly block-size budget."""
    target_block_bytes = 4 << 20   # aim the (TB, S, te) out block at ~4 MiB
    max_block_bytes = 4 << 20      # never let a single (S, te) slab exceed this

    # Embedding tile: prefer full E (lane-dense, fewest grid steps).
    te = E
    if E % 128 == 0 and S * E * itemsize > max_block_bytes:
        cands = [d for d in range(128, E, 128) if E % d == 0]
        te = E
        for d in sorted(cands, reverse=True):
            if S * d * itemsize <= max_block_bytes:
                te = d
                break
        else:
            if cands:
                te = cands[0]

    # Batch tile: grow toward the target block size, as a divisor of B.
    row_bytes = S * te * itemsize
    tb_cap = max(1, target_block_bytes // max(1, row_bytes))
    tb = _largest_divisor_leq(B, tb_cap)

    # Keep >= 2 grid steps when possible (v7x has 2 TensorCores per chip).
    if B > 1 and (B // tb) * (E // te) < 2:
        tb = _largest_divisor_leq(B, B // 2)

    return tb, te


def embedding_layer(x, cls_token, sep_token, coronal, sagittal, axial, positions):
    """x: (B, T, E). Returns (B, T + 4, E), same dtype as x."""
    B, T, E = x.shape
    tp = T // 3
    S = T + 4
    assert positions.shape == (S, E), "positions must be (total_tokens + 4, emb)"

    # ---- Precompute the (S, E) bias: positions + plane per row, cls/sep folded.
    cor_rows = tp + 2                 # rows [0, tp+2): coronal segment
    sag_rows = tp + 1                 # rows [tp+2, 2tp+3): sagittal segment
    ax_rows = S - (2 * tp + 3)        # rows [2tp+3, S): axial segment
    plane_rows = jnp.concatenate(
        [
            jnp.broadcast_to(coronal.reshape(1, E), (cor_rows, E)),
            jnp.broadcast_to(sagittal.reshape(1, E), (sag_rows, E)),
            jnp.broadcast_to(axial.reshape(1, E), (ax_rows, E)),
        ],
        axis=0,
    )
    bias = positions + plane_rows
    bias = bias.at[0].add(cls_token.reshape(E))
    sep_rows_idx = jnp.array([tp + 1, 2 * tp + 2, S - 1])
    bias = bias.at[sep_rows_idx].add(sep_token.reshape(E))   # (S, E)

    # ---- Tiling.
    itemsize = jnp.dtype(x.dtype).itemsize
    bias_itemsize = jnp.dtype(bias.dtype).itemsize
    tb, te = _pick_tiles(B, T, S, E, itemsize)
    grid = (B // tb, E // te)

    # ---- VMEM budget (double-buffered x/out/bias blocks) + scheduler hint.
    x_block = tb * T * te * itemsize
    out_block = tb * S * te * itemsize
    bias_block = S * te * bias_itemsize
    footprint = 2 * (x_block + out_block + bias_block)
    vmem_limit = int(min(64 << 20, max(footprint + (8 << 20), 24 << 20)))

    cost = pl.CostEstimate(
        flops=B * S * E,  # ~1 add per output element after bias folding
        transcendentals=0,
        bytes_accessed=(B * T * E + B * S * E) * itemsize + S * E * bias_itemsize,
    )

    out = pl.pallas_call(
        _make_embedding_kernel(tp, T),
        out_shape=jax.ShapeDtypeStruct((B, S, E), x.dtype),
        grid=grid,
        in_specs=[
            pl.BlockSpec((tb, T, te), lambda b, e: (b, 0, e)),   # x (batch-tiled)
            pl.BlockSpec((S, te), lambda b, e: (0, e)),          # bias (resident)
        ],
        out_specs=pl.BlockSpec((tb, S, te), lambda b, e: (b, 0, e)),
        compiler_params=pltpu.CompilerParams(
            dimension_semantics=("parallel", "parallel"),
            vmem_limit_bytes=vmem_limit,
        ),
        cost_estimate=cost,
    )(x, bias)

    return out


if __name__ == "__main__":
    key = jax.random.PRNGKey(0)
    ks = jax.random.split(key, 7)

    # Small, module-consistent shapes: batch=4, tokens=24 (divisible by 3),
    # emb_size=256 (lane-dense last dim).  Exercises TB > 1 batch tiling.
    B, T, E = 4, 24, 256
    tp = T // 3
    S = T + 4

    x = jax.random.normal(ks[0], (B, T, E), dtype=jnp.float32)
    cls_token = jax.random.normal(ks[1], (1, 1, E), dtype=jnp.float32)
    sep_token = jax.random.normal(ks[2], (1, 1, E), dtype=jnp.float32)
    coronal = jax.random.normal(ks[3], (1, E), dtype=jnp.float32)
    sagittal = jax.random.normal(ks[4], (1, E), dtype=jnp.float32)
    axial = jax.random.normal(ks[5], (1, E), dtype=jnp.float32)
    positions = jax.random.normal(ks[6], (S, E), dtype=jnp.float32)

    out = embedding_layer(
        x, cls_token, sep_token, coronal, sagittal, axial, positions
    )
    jax.block_until_ready(out)

    # Plain-JAX reference with identical semantics to the PyTorch forward.
    cls_b = jnp.broadcast_to(cls_token, (B, 1, E))
    sep_b = jnp.broadcast_to(sep_token, (B, 1, E))
    ref = jnp.concatenate(
        [cls_b, x[:, :tp], sep_b, x[:, tp : 2 * tp], sep_b, x[:, 2 * tp :], sep_b],
        axis=1,
    )
    cor_end = 1 + tp + 1
    sag_end = cor_end + tp + 1
    ref = ref.at[:, :cor_end].add(coronal)
    ref = ref.at[:, cor_end:sag_end].add(sagittal)
    ref = ref.at[:, sag_end:].add(axial)
    ref = ref + positions

    assert out.shape == (B, S, E) and out.dtype == x.dtype
    assert jnp.allclose(out, ref, atol=1e-5, rtol=1e-5)

    print("KERNEL_OK")
</pallas_src>

<mosaic_0001>
module attributes {stable_mosaic.version = 11 : i64} {
  func.func @kernel(%arg0: i32, %arg1: i32, %arg2: memref<2x24x256xf32, #tpu.memory_space<vmem>>, %arg3: memref<28x256xf32, #tpu.memory_space<vmem>>, %arg4: memref<2x28x256xf32, #tpu.memory_space<vmem>>) attributes {dimension_semantics = [#tpu.dimension_semantics<parallel>, #tpu.dimension_semantics<parallel>], iteration_bounds = array<i64: 2, 1>, scalar_prefetch = 0 : i64, scratch_operands = 0 : i64, tpu.core_type = #tpu.core_type<tc>, window_params = [{transform_indices = @transform_0, window_bounds = array<i64: 2, 24, 256>}, {transform_indices = @transform_1, window_bounds = array<i64: 28, 256>}, {transform_indices = @transform_2, window_bounds = array<i64: 2, 28, 256>}]} {
    %c0 = arith.constant 0 : index
    %c0_0 = arith.constant 0 : index
    %0 = vector.load %arg3[%c0, %c0_0] : memref<28x256xf32, #tpu.memory_space<vmem>>, vector<1x256xf32>
    %1 = vector.shape_cast %0 : vector<1x256xf32> to vector<1x1x256xf32>
    %2 = vector.shape_cast %1 : vector<1x1x256xf32> to vector<1x1x256xf32>
    %3 = vector.broadcast %2 : vector<1x1x256xf32> to vector<2x1x256xf32>
    %c0_1 = arith.constant 0 : index
    %c0_2 = arith.constant 0 : index
    %c0_3 = arith.constant 0 : index
    %4 = vector.load %arg4[%c0_1, %c0_2, %c0_3] : memref<2x28x256xf32, #tpu.memory_space<vmem>>, vector<2x1x256xf32>
    tpu.vector_store %arg4[%c0_1, %c0_2, %c0_3], %3 {strides = array<i32>} : memref<2x28x256xf32, #tpu.memory_space<vmem>>, vector<2x1x256xf32>,
    %c0_4 = arith.constant 0 : index
    %c0_5 = arith.constant 0 : index
    %c0_6 = arith.constant 0 : index
    %5 = vector.load %arg2[%c0_4, %c0_5, %c0_6] : memref<2x24x256xf32, #tpu.memory_space<vmem>>, vector<2x8x256xf32>
    %c1 = arith.constant 1 : index
    %c0_7 = arith.constant 0 : index
    %6 = vector.load %arg3[%c1, %c0_7] : memref<28x256xf32, #tpu.memory_space<vmem>>, vector<8x256xf32>
    %7 = vector.shape_cast %6 : vector<8x256xf32> to vector<1x8x256xf32>
    %8 = vector.broadcast %7 : vector<1x8x256xf32> to vector<2x8x256xf32>
    %9 = arith.addf %5, %8 : vector<2x8x256xf32>
    %c0_8 = arith.constant 0 : index
    %c1_9 = arith.constant 1 : index
    %c0_10 = arith.constant 0 : index
    %10 = vector.load %arg4[%c0_8, %c1_9, %c0_10] : memref<2x28x256xf32, #tpu.memory_space<vmem>>, vector<2x8x256xf32>
    tpu.vector_store %arg4[%c0_8, %c1_9, %c0_10], %9 {strides = array<i32>} : memref<2x28x256xf32, #tpu.memory_space<vmem>>, vector<2x8x256xf32>,
    %c9 = arith.constant 9 : index
    %c0_11 = arith.constant 0 : index
    %11 = vector.load %arg3[%c9, %c0_11] : memref<28x256xf32, #tpu.memory_space<vmem>>, vector<1x256xf32>
    %12 = vector.shape_cast %11 : vector<1x256xf32> to vector<1x1x256xf32>
    %13 = vector.shape_cast %12 : vector<1x1x256xf32> to vector<1x1x256xf32>
    %14 = vector.broadcast %13 : vector<1x1x256xf32> to vector<2x1x256xf32>
    %c0_12 = arith.constant 0 : index
    %c9_13 = arith.constant 9 : index
    %c0_14 = arith.constant 0 : index
    %15 = vector.load %arg4[%c0_12, %c9_13, %c0_14] : memref<2x28x256xf32, #tpu.memory_space<vmem>>, vector<2x1x256xf32>
    tpu.vector_store %arg4[%c0_12, %c9_13, %c0_14], %14 {strides = array<i32>} : memref<2x28x256xf32, #tpu.memory_space<vmem>>, vector<2x1x256xf32>,
    %c0_15 = arith.constant 0 : index
    %c8 = arith.constant 8 : index
    %c0_16 = arith.constant 0 : index
    %16 = vector.load %arg2[%c0_15, %c8, %c0_16] : memref<2x24x256xf32, #tpu.memory_space<vmem>>, vector<2x8x256xf32>
    %c10 = arith.constant 10 : index
    %c0_17 = arith.constant 0 : index
    %17 = vector.load %arg3[%c10, %c0_17] : memref<28x256xf32, #tpu.memory_space<vmem>>, vector<8x256xf32>
    %18 = vector.shape_cast %17 : vector<8x256xf32> to vector<1x8x256xf32>
    %19 = vector.broadcast %18 : vector<1x8x256xf32> to vector<2x8x256xf32>
    %20 = arith.addf %16, %19 : vector<2x8x256xf32>
    %c0_18 = arith.constant 0 : index
    %c10_19 = arith.constant 10 : index
    %c0_20 = arith.constant 0 : index
    %21 = vector.load %arg4[%c0_18, %c10_19, %c0_20] : memref<2x28x256xf32, #tpu.memory_space<vmem>>, vector<2x8x256xf32>
    tpu.vector_store %arg4[%c0_18, %c10_19, %c0_20], %20 {strides = array<i32>} : memref<2x28x256xf32, #tpu.memory_space<vmem>>, vector<2x8x256xf32>,
    %c18 = arith.constant 18 : index
    %c0_21 = arith.constant 0 : index
    %22 = vector.load %arg3[%c18, %c0_21] : memref<28x256xf32, #tpu.memory_space<vmem>>, vector<1x256xf32>
    %23 = vector.shape_cast %22 : vector<1x256xf32> to vector<1x1x256xf32>
    %24 = vector.shape_cast %23 : vector<1x1x256xf32> to vector<1x1x256xf32>
    %25 = vector.broadcast %24 : vector<1x1x256xf32> to vector<2x1x256xf32>
    %c0_22 = arith.constant 0 : index
    %c18_23 = arith.constant 18 : index
    %c0_24 = arith.constant 0 : index
    %26 = vector.load %arg4[%c0_22, %c18_23, %c0_24] : memref<2x28x256xf32, #tpu.memory_space<vmem>>, vector<2x1x256xf32>
    tpu.vector_store %arg4[%c0_22, %c18_23, %c0_24], %25 {strides = array<i32>} : memref<2x28x256xf32, #tpu.memory_space<vmem>>, vector<2x1x256xf32>,
    %c0_25 = arith.constant 0 : index
    %c16 = arith.constant 16 : index
    %c0_26 = arith.constant 0 : index
    %27 = vector.load %arg2[%c0_25, %c16, %c0_26] : memref<2x24x256xf32, #tpu.memory_space<vmem>>, vector<2x8x256xf32>
    %c19 = arith.constant 19 : index
    %c0_27 = arith.constant 0 : index
    %28 = vector.load %arg3[%c19, %c0_27] : memref<28x256xf32, #tpu.memory_space<vmem>>, vector<8x256xf32>
    %29 = vector.shape_cast %28 : vector<8x256xf32> to vector<1x8x256xf32>
    %30 = vector.broadcast %29 : vector<1x8x256xf32> to vector<2x8x256xf32>
    %31 = arith.addf %27, %30 : vector<2x8x256xf32>
    %c0_28 = arith.constant 0 : index
    %c19_29 = arith.constant 19 : index
    %c0_30 = arith.constant 0 : index
    %32 = vector.load %arg4[%c0_28, %c19_29, %c0_30] : memref<2x28x256xf32, #tpu.memory_space<vmem>>, vector<2x8x256xf32>
    tpu.vector_store %arg4[%c0_28, %c19_29, %c0_30], %31 {strides = array<i32>} : memref<2x28x256xf32, #tpu.memory_space<vmem>>, vector<2x8x256xf32>,
    %c27 = arith.constant 27 : index
    %c0_31 = arith.constant 0 : index
    %33 = vector.load %arg3[%c27, %c0_31] : memref<28x256xf32, #tpu.memory_space<vmem>>, vector<1x256xf32>
    %34 = vector.shape_cast %33 : vector<1x256xf32> to vector<1x1x256xf32>
    %35 = vector.shape_cast %34 : vector<1x1x256xf32> to vector<1x1x256xf32>
    %36 = vector.broadcast %35 : vector<1x1x256xf32> to vector<2x1x256xf32>
    %c0_32 = arith.constant 0 : index
    %c27_33 = arith.constant 27 : index
    %c0_34 = arith.constant 0 : index
    %37 = vector.load %arg4[%c0_32, %c27_33, %c0_34] : memref<2x28x256xf32, #tpu.memory_space<vmem>>, vector<2x1x256xf32>
    tpu.vector_store %arg4[%c0_32, %c27_33, %c0_34], %36 {strides = array<i32>} : memref<2x28x256xf32, #tpu.memory_space<vmem>>, vector<2x1x256xf32>,
    return
  }
  func.func @transform_0(%arg0: i32, %arg1: i32) -> (i32, i32, i32) {
    %c0_i32 = arith.constant 0 : i32
    %c0_i32_0 = arith.constant 0 : i32
    return %arg0, %c0_i32, %arg1 : i32, i32, i32
  }
  func.func @transform_1(%arg0: i32, %arg1: i32) -> (i32, i32) {
    %c0_i32 = arith.constant 0 : i32
    %c0_i32_0 = arith.constant 0 : i32
    return %c0_i32, %arg1 : i32, i32
  }
  func.func @transform_2(%arg0: i32, %arg1: i32) -> (i32, i32, i32) {
    %c0_i32 = arith.constant 0 : i32
    %c0_i32_0 = arith.constant 0 : i32
    return %arg0, %c0_i32, %arg1 : i32, i32, i32
  }
}

</mosaic_0001>

<bundles_post_ra>
// kernel: tpu_custom_call.1
= control target key start
LH: loop header
LB: loop body
LE: loop exit
PB: predicated region body
PF: predicated region fallthrough
CT: control target
= control target key end

     0   :  { %7 = vsyncpa [#allocation3], 0  ;;  %s964_s0 = inlined_call_operand.hbm [shape: f32[4,24,256], index: 0, kind: input, shape index: {}]   ;;  %s965_s1 = inlined_call_operand.hbm [shape: f32[28,256], index: 1, kind: input, shape index: {}]   ;;  %s966_s2 = inlined_call_operand.vmem [shape: f32[4,28,256], index: 2, kind: output, shape index: {}]  }
   0x1   :  { %9 = vsyncpa [#allocation3 + $0x1], 0 }
   0x2   :  { %10 = vsyncpa [#allocation5], 0  ;;  %s727_s9 = smov 0   ;;  %s729_s10 = smov 0  }
   0x3   :  { %s731_s11 = smov 0   ;;  %s733_s12 = smov 0  }
   0x4   :  { %s735_s13 = smov 0   ;;  %s737_s14 = smov 0  }
   0x5 LB: > { %s500_s15 = sadd.s32 4294967295, %s706_s14   ;;  %p50_p0 = scmp.ne.s32.totalorder %s690_s10, %s686_s9  ;;  %s706_s14 = sphi %s737_s14, %s16_s14   ;;  %s702_s13 = sphi %s735_s13, %s985_s13   ;;  %s698_s12 = sphi %s733_s12, %s984_s12   ;;  %s694_s11 = sphi %s731_s11, %s983_s11   ;;  %s690_s10 = sphi %s729_s10, %s982_s10   ;;  %s686_s9 = sphi %s727_s9, %s981_s9  }
   0x6   : > { %p757_p1 = scmp.eq.s32.totalorder %s500_s15, 0  ;;  %p502_p2 = scmp.ge.s32.totalorder %s706_s14, 1 }
   0x7   : > { %p115_p3 = scmp.lt.s32.totalorder %s706_s14, 3  ;;  %s708_s19 = smov [#allocation4]  }
   0x8   : > { %s971_s16 = scalar_select %p757_p1, 1, 0 }
   0x9   : > { %p765_p4 = por %p757_p1, %p50_p0  ;;  %p769_p5 = pnand %p502_p2, %p115_p3 }
   0xa   : > { %s130_s20 = sshll.u32 %s708_s19, 4  ;;  %s28_s22 = sadd.s32 1, %s702_s13  ;;  %s131_s20 = int_to_ptr.vmem [resolvable:$true] %s130_s20 }
   0xb   : > { %s972_s17 = scalar_select %p765_p4, 1, 0 }
   0xc   : > { %s973_s18 = scalar_select %p769_p5, 1, 0 }
   0xd   : > { %p532_p6 = pneg %p769_p5  ;;  %s594_s25 = scalar_lea.hbm %s965_s1, 1024 }
   0xe   : > { %p595_p8 = scmp.ne.s32.totalorder %s965_s1, %s594_s25  ;;  %p601_p12 = scmp.lt.u32.totalorder %s594_s25, %s965_s1 }
   0xf   : > { %p777_p7 = pnand %p532_p6, %p757_p1 }
  0x11   : > { %p596_p9 = pneg %p777_p7 }
  0x13   : > { %p597_p10 = pnand %p596_p9, %p595_p8 }
  0x15   : > { %p598_p11 = pneg %p597_p10 }
  0x17   : > { %p603_p13 = pnand %p601_p12, %p598_p11 }
  0x19   : > { %606 = shalt.err (!%p603_p13)
}
  0x1a   : > { %s607_s30 = scalar_lea.vmem %s131_s20, 1024  ;;  %p615_p6 = scmp.lt.s32.totalorder %s131_s20, %s131_s20 }
  0x1b   : > { %p608_p0 = scmp.ne.s32.totalorder %s131_s20, %s607_s30  ;;  %p616_p1 = scmp.lt.s32.totalorder %s607_s30, %s607_s30 }
  0x1d   : > { %p610_p2 = pnand %p608_p0, %p596_p9  ;;  %p617_p4 = por %p616_p1, %p615_p6 }
  0x1f   : > { %p611_p3 = pneg %p610_p2 }
  0x21   : > { %p618_p5 = pnand %p617_p4, %p611_p3 }
  0x23   : > { %621 = shalt.err (!%p618_p5)
}
  0x24   : > { %s709_s3 = smov 256   ;;  %s710_s4 = smov 16  }
  0x25   : > { %535 = dma.hbm_to_vmem [thread:$0]  (!%p777_p7), %s965_s1, 1024, %s131_s20, [#allocation5], %s709_s3, %s709_s3, %s710_s4  }
  0x26   : > { %p30_p1 = scmp.ge.s32.totalorder %s28_s22, 2  ;;  %s37_s7 = sadd.s32 1, %s694_s11 }
  0x27   : > { %p44_p4 = scmp.ne.s32.totalorder %s694_s11, %s690_s10  ;;  %p45_p5 = scmp.eq.s32.totalorder %s706_s14, 0 }
  0x28   : > { %s987_s22 = smov (%p30_p1, %s28_s22), 0  ;;  %p541_p9 = scmp.lt.s32.totalorder %s706_s14, 2 }
  0x29   : > { %p46_p8 = por %p45_p5, %p44_p4  ;;  %s32_s8 = ssub.s32 %s702_s13, %s987_s22 }
  0x2a   : > { %s144_s9 = sand.u32 1, %s694_s11   ;;  %p35_p10 = scmp.eq.s32.totalorder %s32_s8, 0 }
  0x2b   : > { %s523_s15 = smul.u32 96, %s144_s9  ;;  %p811_p11 = pnand %p541_p9, %p46_p8 }
  0x2c   : > { %s816_s20 = scalar_select %p35_p10, %s694_s11, %s37_s7  }
  0x2d   : > { %s524_s21 = smul.u32 1536, %s702_s13  ;;  %s148_s23 = scalar_lea.vmem [#allocation2], %s523_s15 }
  0x2e   : > { %s158_s24 = sshll.u32 %s148_s23, 4  ;;  %s826_s28 = scalar_lea.sflag [#allocation3], %s144_s9  ;;  %s824_s24 = int_to_ptr.vmem [resolvable:$true] %s158_s24 }
  0x2f   : > { %s822_s27 = scalar_lea.hbm %s964_s0, %s524_s21  ;;  %p624_p12 = pneg %p811_p11 }
  0x30   : > { %s622_s29 = scalar_lea.hbm %s822_s27, 1536  ;;  %s627_s6 = scalar_lea.hbm %s964_s0, 3072 }
  0x31   : > { %p623_p7 = scmp.ne.s32.totalorder %s822_s27, %s622_s29  ;;  %p628_p2 = scmp.lt.u32.totalorder %s822_s27, %s964_s0 }
  0x32   : > { %p629_p3 = scmp.lt.u32.totalorder %s627_s6, %s622_s29  ;;  %p631_p1 = scmp.lt.u32.totalorder %s622_s29, %s822_s27 }
  0x33   : > { %p625_p13 = pnand %p624_p12, %p623_p7 }
  0x34   : > { %p630_p6 = por %p629_p3, %p628_p2 }
  0x35   : > { %p626_p0 = pneg %p625_p13 }
  0x36   : > { %p632_p4 = por %p631_p1, %p630_p6 }
  0x38   : > { %p633_p5 = pnand %p632_p4, %p626_p0 }
  0x3a   : > { %636 = shalt.err (!%p633_p5)
}
  0x3b   : > { %s637_s9 = scalar_lea.vmem %s824_s24, 1536  ;;  %s711_s15 = smov [#allocation2]  }
  0x3c   : > { %p638_p8 = scmp.ne.s32.totalorder %s824_s24, %s637_s9  ;;  %s642_s21 = sshll.u32 %s711_s15, 4  ;;  %s643_s21 = int_to_ptr.vmem [resolvable:$false] %s642_s21 }
  0x3d   : > { %s644_s23 = scalar_lea.vmem %s643_s21, 3072  ;;  %p645_p7 = scmp.lt.s32.totalorder %s824_s24, %s643_s21 }
  0x3e   : > { %p640_p9 = pnand %p638_p8, %p624_p12  ;;  %p646_p13 = scmp.lt.s32.totalorder %s644_s23, %s637_s9 }
  0x40   : > { %p641_p10 = pneg %p640_p9  ;;  %p647_p2 = por %p646_p13, %p645_p7 }
  0x42   : > { %p648_p3 = pnand %p647_p2, %p641_p10 }
  0x44   : > { %651 = shalt.err (!%p648_p3)
}
  0x45   : > { %539 = dma.hbm_to_vmem [thread:$0]  (!%p811_p11), %s822_s27, 1536, %s824_s24, %s826_s28, %s709_s3, %s709_s3, %s710_s4  }
  0x46   : > { %p976_p12 = scmp.ne.s32.totalorder %s973_s18, 0 }
  0x47   : > { %s172_s25 = sand.u32 (!%p976_p12), 1, %s690_s10   ;;  %p977_p0 = scmp.ne.s32.totalorder (!%p976_p12), %s972_s17, 0 }
  0x48   : > { %170 = sbr.rel (%p976_p12) target bundleno = 111 (0x6f), region = 28  ;;  %s173_s29 = scalar_lea.sflag (!%p976_p12), [#allocation3], %s172_s25 }
  0x49   : > { %s525_s26 = smul.u32 (!%p976_p12), 96, %s172_s25 }
  0x4b   : > { %s860_s30 = scalar_lea.vmem (!%p976_p12), [#allocation2], %s525_s26 }
  0x4f   : > { %677 = dma.done.wait (%p977_p0), %s173_s29, 1536  }
  0x50   : > { %679 = vsyncadd (%p977_p0), %s173_s29, 4294965760  ;;  %p978_p6 = scmp.ne.s32.totalorder %s971_s16, 0 }
  0x52   : > { %681 = dma.done.wait (%p978_p6), [#allocation5], 1024  }
  0x53   : > { %683 = vsyncadd (%p978_p6), [#allocation5], 4294966272  ;;  %s510_s18 = sshll.u32 %s698_s12, 1  ;;  %v222_v0 = vlaneseq  ;;  %v221_v2 = vld [vmem:[#allocation4] ss:$8 sm:$0x3] }
  0x54   : > { %p211_p11 = scmp.lt.s32.totalorder %s510_s18, 3  ;;  %vm243_vm1 = vcmask 1046528   ;;  %vm296_vm2 = vcmask 1045504   ;;  %v231_v3 = vld [vmem:[%s860_s30] sm:$0xff]  ;;  %v237_v5 = vld [vmem:[#allocation4 + $0x10] sm:$0x1] }
  0x55   : > { %vm871_vm0 = vcmp.lt.s32.totalorder %v222_v0, 256  ;;  %v235_v4 = vld [vmem:[#allocation4] sm:$0xfe]  ;;  %vm349_vm3 = vcmask 1044480   ;;  %v233_v6 = vld [vmem:[%s860_s30 + $0x30] sm:$0xff]  ;;  %v245_v8 = vrot.slane %v237_v5, 1 }
  0x56   : > { %s989_s18 = smov (!%p211_p11, %s510_s18), 3  ;;  %v244_v7 = vrot.slane %v235_v4, 1  ;;  %v232_v9 = vld [vmem:[%s860_s30 + $0x8] sm:$0xff]  ;;  %v238_v11 = vld [vmem:[#allocation4 + $0x18] sm:$0x1]  ;;  %v284_v21 = vld [vmem:[%s860_s30 + $0x10] sm:$0xff] }
  0x57   : > { %s522_s3 = sshll.u32 %s989_s18, 6  ;;  %v236_v10 = vld [vmem:[#allocation4 + $0x8] sm:$0xfe]  ;;  %v277_v13 = vld [vmem:[#allocation4 + $0x11] ss:$8 sm:$0x3] }
  0x58   : > { %s878_s19 = scalar_lea.vmem %s966_s2, %s522_s3  ;;  %v247_v12 = vrot.slane %v236_v10, 1  ;;  %v246_v14 = vsel %vm243_vm1, %v244_v7, %v245_v8  ;;  %v234_v15 = vld [vmem:[%s860_s30 + $0x38] sm:$0xff]  ;;  %v248_v16 = vrot.slane %v238_v11, 1  ;;  %v288_v17 = vld [vmem:[#allocation4 + $0x10] sm:$0xfc]  ;;  %v286_v22 = vld [vmem:[%s860_s30 + $0x40] sm:$0xff] }
  0x59   : > { %226 = vst.msk [vmem:[%s878_s19] ss:$8 sm:$0x3] %vm871_vm0, %v221_v2  ;;  %513 = vst.msk [vmem:[%s878_s19 + $0x40] ss:$8 sm:$0x3] %vm871_vm0, %v221_v2  ;;  %v252_v19 = vadd.f32 %v246_v14, %v231_v3  ;;  %v254_v20 = vadd.f32 %v246_v14, %v233_v6 }
  0x5a   : > { %514 = vst.msk [vmem:[%s878_s19 + $0x11] ss:$8 sm:$0x3] %vm871_vm0, %v277_v13  ;;  %v290_v18 = vld [vmem:[#allocation4 + $0x20] sm:$0x3]  ;;  %v297_v23 = vrot.slane %v288_v17, 2  ;;  %v249_v26 = vsel %vm243_vm1, %v247_v12, %v248_v16 }
  0x5b   : > { %515 = vst.msk [vmem:[%s878_s19 + $0x51] ss:$8 sm:$0x3] %vm871_vm0, %v277_v13  ;;  %v298_v24 = vrot.slane %v290_v18, 2  ;;  %v289_v25 = vld [vmem:[#allocation4 + $0x18] sm:$0xfc]  ;;  %v253_v32 = vadd.f32 %v249_v26, %v232_v9  ;;  %v255_v33 = vadd.f32 %v249_v26, %v234_v15 }
  0x5c   : > { %v291_v27 = vld [vmem:[#allocation4 + $0x28] sm:$0x3]  ;;  %v300_v28 = vrot.slane %v289_v25, 2  ;;  %v330_v29 = vld [vmem:[#allocation4 + $0x22] ss:$8 sm:$0x3] }
  0x5d   : > { %v260_v30 = vrot.slane %v252_v19, 7  ;;  %v262_v31 = vrot.slane %v254_v20, 7  ;;  %v285_v34 = vld [vmem:[%s860_s30 + $0x18] sm:$0xff]  ;;  %v287_v35 = vld [vmem:[%s860_s30 + $0x48] sm:$0xff]  ;;  %v341_v36 = vld [vmem:[#allocation4 + $0x20] sm:$0xf8]  ;;  %v299_v37 = vsel %vm296_vm2, %v297_v23, %v298_v24 }
  0x5e   : > { %516 = vst.msk [vmem:[%s878_s19 + $0x22] ss:$8 sm:$0x3] %vm871_vm0, %v330_v29  ;;  %v301_v38 = vrot.slane %v291_v27, 2  ;;  %v337_v39 = vld [vmem:[%s860_s30 + $0x20] sm:$0xff]  ;;  %v339_v40 = vld [vmem:[%s860_s30 + $0x50] sm:$0xff]  ;;  %v305_v45 = vadd.f32 %v299_v37, %v284_v21  ;;  %v307_v46 = vadd.f32 %v299_v37, %v286_v22 }
  0x5f   : > { %517 = vst.msk [vmem:[%s878_s19 + $0x62] ss:$8 sm:$0x3] %vm871_vm0, %v330_v29  ;;  %v343_v41 = vld [vmem:[#allocation4 + $0x30] sm:$0x7]  ;;  %v350_v42 = vrot.slane %v341_v36, 3 }
  0x60   : > { %268 = vst [vmem:[%s878_s19] sm:$0xfe] %v260_v30  ;;  %270 = vst [vmem:[%s878_s19 + $0x10] sm:$0x1] %v260_v30  ;;  %v261_v43 = vrot.slane %v253_v32, 7  ;;  %v263_v44 = vrot.slane %v255_v33, 7  ;;  %v302_v49 = vsel %vm296_vm2, %v300_v28, %v301_v38  ;;  %v351_v50 = vrot.slane %v343_v41, 3 }
  0x61   : > { %v342_v47 = vld [vmem:[#allocation4 + $0x28] sm:$0xf8]  ;;  %v344_v48 = vld [vmem:[#allocation4 + $0x38] sm:$0x7]  ;;  %272 = vst [vmem:[%s878_s19 + $0x40] sm:$0xfe] %v262_v31  ;;  %v306_v56 = vadd.f32 %v302_v49, %v285_v34  ;;  %v308_v57 = vadd.f32 %v302_v49, %v287_v35 }
  0x62   : > { %274 = vst [vmem:[%s878_s19 + $0x50] sm:$0x1] %v262_v31  ;;  %v353_v51 = vrot.slane %v342_v47, 3  ;;  %v354_v52 = vrot.slane %v344_v48, 3  ;;  %269 = vst [vmem:[%s878_s19 + $0x8] sm:$0xfe] %v261_v43  ;;  %v352_v60 = vsel %vm349_vm3, %v350_v42, %v351_v50 }
  0x63   : > { %v383_v53 = vld [vmem:[#allocation4 + $0x33] ss:$8 sm:$0x3]  ;;  %271 = vst [vmem:[%s878_s19 + $0x18] sm:$0x1] %v261_v43  ;;  %v313_v54 = vrot.slane %v305_v45, 6  ;;  %v358_v0 = vadd.f32 %v352_v60, %v337_v39  ;;  %v360_v2 = vadd.f32 %v352_v60, %v339_v40 }
  0x64   : > { %v315_v55 = vrot.slane %v307_v46, 6  ;;  %v338_v58 = vld [vmem:[%s860_s30 + $0x28] sm:$0xff]  ;;  %v340_v59 = vld [vmem:[%s860_s30 + $0x58] sm:$0xff]  ;;  %518 = vst.msk [vmem:[%s878_s19 + $0x33] ss:$8 sm:$0x3] %vm871_vm0, %v383_v53  ;;  %v355_v61 = vsel %vm349_vm3, %v353_v51, %v354_v52 }
  0x65   : > { %273 = vst [vmem:[%s878_s19 + $0x48] sm:$0xfe] %v263_v44  ;;  %275 = vst [vmem:[%s878_s19 + $0x58] sm:$0x1] %v263_v44  ;;  %v314_v62 = vrot.slane %v306_v56, 6  ;;  %v316_v63 = vrot.slane %v308_v57, 6  ;;  %v359_v3 = vadd.f32 %v355_v61, %v338_v58  ;;  %v361_v1 = vadd.f32 %v355_v61, %v340_v59 }
  0x66   : > { %519 = vst.msk [vmem:[%s878_s19 + $0x73] ss:$8 sm:$0x3] %vm871_vm0, %v383_v53  ;;  %321 = vst [vmem:[%s878_s19 + $0x10] sm:$0xfc] %v313_v54  ;;  %v366_v4 = vrot.slane %v358_v0, 5 }
  0x67   : > { %323 = vst [vmem:[%s878_s19 + $0x20] sm:$0x3] %v313_v54  ;;  %325 = vst [vmem:[%s878_s19 + $0x50] sm:$0xfc] %v315_v55  ;;  %v368_v5 = vrot.slane %v360_v2, 5  ;;  %v367_v6 = vrot.slane %v359_v3, 5 }
  0x68   : > { %327 = vst [vmem:[%s878_s19 + $0x60] sm:$0x3] %v315_v55  ;;  %322 = vst [vmem:[%s878_s19 + $0x18] sm:$0xfc] %v314_v62  ;;  %v369_v7 = vrot.slane %v361_v1, 5 }
  0x69   : > { %324 = vst [vmem:[%s878_s19 + $0x28] sm:$0x3] %v314_v62  ;;  %326 = vst [vmem:[%s878_s19 + $0x58] sm:$0xfc] %v316_v63 }
  0x6a   : > { %328 = vst [vmem:[%s878_s19 + $0x68] sm:$0x3] %v316_v63  ;;  %374 = vst [vmem:[%s878_s19 + $0x20] sm:$0xf8] %v366_v4 }
  0x6b   : > { %376 = vst [vmem:[%s878_s19 + $0x30] sm:$0x7] %v366_v4  ;;  %378 = vst [vmem:[%s878_s19 + $0x60] sm:$0xf8] %v368_v5 }
  0x6c   : > { %375 = vst [vmem:[%s878_s19 + $0x28] sm:$0xf8] %v367_v6  ;;  %377 = vst [vmem:[%s878_s19 + $0x38] sm:$0x7] %v367_v6 }
  0x6d   : > { %380 = vst [vmem:[%s878_s19 + $0x70] sm:$0x7] %v368_v5  ;;  %379 = vst [vmem:[%s878_s19 + $0x68] sm:$0xf8] %v369_v7 }
  0x6e   : > { %381 = vst [vmem:[%s878_s19 + $0x78] sm:$0x7] %v369_v7 }
  0x6f PF: > { %s16_s14 = sadd.s32 1, %s706_s14   ;;  %s981_s9 = smov %s690_s10 }
  0x70   : > { %p13_p1 = scmp.ge.s32.totalorder %s16_s14, 4   ;;  %s982_s10 = smov %s694_s11 }
  0x71   : > { %s983_s11 = smov %s816_s20  ;;  %s984_s12 = smov %s702_s13 }
  0x72   : > { %s985_s13 = smov %s987_s22  ;;  %15 = sbr.rel (!%p13_p1) target bundleno = 5 (0x5), region = 83 }
  0x79   :  { %423 = vsyncpa [#allocation3], 1 }
  0x7a   :  { %425 = vsyncpa [#allocation3 + $0x1], 1 }
  0x7b   :  { %426 = vsyncpa [#allocation5], 1 }

</bundles_post_ra>
